<compile_context>
chip_gen: v7x
topology: tpu7x:2x2x1
jax: 0.10.0
libtpu: 0.0.40
codegen_flags: <defaults>
</compile_context>

<pallas_src>
import numpy as np
import jax
import jax.numpy as jnp
from jax.experimental import pallas as pl
from jax.experimental.pallas import tpu as pltpu

EPS = 1e-5
KH = KW = 3  # kernel_size=(3,3), padding=(1,1)


def _make_fused_kernel(N, H, W, Cin, Cout):
    NH = N * H
    WCo = W * Cout
    inv_n = 1.0 / float(N * H * W)

    def kernel(x_ref, w1_ref, w2_ref, g1_ref, be1_ref, g2_ref, be2_ref,
               ntop_ref, nbot_ref, out_ref):
        not_top = ntop_ref[...]   # (NH, 1) f32: 0.0 where h == 0
        not_bot = nbot_ref[...]   # (NH, 1) f32: 0.0 where h == H-1

        def conv_bn_relu(x2d, w_ref, g_ref, be_ref):
            # ---- 3x3 conv: 3 MXU matmuls (one per kernel row) against banded
            #      weights; W-taps + W zero-padding are folded into the band, the
            #      H-taps come from row-rolls of the results + boundary masks. ----
            xb = x2d.astype(jnp.bfloat16)
            y0 = jnp.dot(xb, w_ref[0], preferred_element_type=jnp.float32)
            y1 = jnp.dot(xb, w_ref[1], preferred_element_type=jnp.float32)
            y2 = jnp.dot(xb, w_ref[2], preferred_element_type=jnp.float32)
            acc = y1                                                  # dh = 1
            acc = acc + not_top * pltpu.roll(y0, 1, axis=0)           # out[h] += x[h-1] @ W0
            acc = acc + not_bot * pltpu.roll(y2, NH - 1, axis=0)      # out[h] += x[h+1] @ W2
            # NOTE: conv bias omitted on purpose - it cancels under train-mode BN.

            # ---- BatchNorm2d (training mode), one-pass stats, all lane-resident ----
            s = jnp.sum(acc, axis=0, keepdims=True)          # (1, W*Cout)
            ss = jnp.sum(acc * acc, axis=0, keepdims=True)   # (1, W*Cout)
            sh = Cout
            while sh < WCo:        # log2(W) lane roll-add tree: per-channel totals,
                s = s + pltpu.roll(s, sh, axis=1)      # result already broadcast to
                ss = ss + pltpu.roll(ss, sh, axis=1)   # every w lane (no scatter)
                sh *= 2
            mean = s * inv_n                                  # (1, W*Cout)
            var = ss * inv_n - mean * mean                    # biased variance
            scale = jax.lax.rsqrt(var + EPS) * g_ref[...]     # gamma pre-tiled on lanes
            bias = be_ref[...] - mean * scale                 # beta pre-tiled on lanes

            # ---- affine + ReLU (lane-dense) ----
            return jnp.maximum(acc * scale + bias, 0.0)       # (NH, W*Cout) f32

        h1 = conv_bn_relu(x_ref[...], w1_ref, g1_ref, be1_ref)
        out_ref[...] = conv_bn_relu(h1, w2_ref, g2_ref, be2_ref)

    return kernel


def _make_band_weights(w9, W, cin, cout):
    """w9: (9, cin, cout) -> (3, W*cin, W*cout) banded weights.

    band[dh][w2*cin + ci, w*cout + co] = w9[dh*3+dw, ci, co] with w2 = w + dw - 1,
    zero outside the valid band (this implements the W zero-padding).
    """
    sel = np.zeros((KW, W, W), np.float32)
    for dw in range(KW):
        for w in range(W):
            w2 = w + dw - 1
            if 0 <= w2 < W:
                sel[dw, w2, w] = 1.0
    w4 = w9.reshape(KH, KW, cin, cout)
    band = jnp.einsum('hdio,dvw->hviwo', w4, jnp.asarray(sel))
    return band.reshape(KH, W * cin, W * cout)


def inconv_forward(x_nchw, params):
    """InConv.forward. x_nchw: (N, Cin, H, W). Returns (N, Cout, H, W)."""
    N, Cin, H, W = x_nchw.shape
    Cout = params["w1"].shape[-1]
    assert (W & (W - 1)) == 0 and W > 0, "lane roll-tree BN reduction needs power-of-two W"

    # NCHW -> lane-dense (N*H, W*Cin) slab; bf16 for the MXU (halves DMA + VMEM).
    x2 = jnp.transpose(x_nchw, (0, 2, 3, 1)).reshape(N * H, W * Cin)
    x2 = x2.astype(jnp.bfloat16)

    w1 = _make_band_weights(params["w1"], W, Cin, Cout).astype(jnp.bfloat16)
    w2 = _make_band_weights(params["w2"], W, Cout, Cout).astype(jnp.bfloat16)

    # gamma / beta pre-tiled onto the (w, c) lane layout (f32, BN math stays f32).
    g1 = jnp.tile(params["g1"].astype(jnp.float32), (1, W))
    be1 = jnp.tile(params["be1"].astype(jnp.float32), (1, W))
    g2 = jnp.tile(params["g2"].astype(jnp.float32), (1, W))
    be2 = jnp.tile(params["be2"].astype(jnp.float32), (1, W))

    # image-boundary row masks for the +/-1 row taps (zero the wrapped rows).
    hh = np.arange(N * H) % H
    not_top = jnp.asarray((hh != 0).astype(np.float32)).reshape(N * H, 1)
    not_bot = jnp.asarray((hh != H - 1).astype(np.float32)).reshape(N * H, 1)

    vmem = pl.BlockSpec(memory_space=pltpu.MemorySpace.VMEM)
    out2d = pl.pallas_call(
        _make_fused_kernel(N, H, W, Cin, Cout),
        out_shape=jax.ShapeDtypeStruct((N * H, W * Cout), jnp.float32),
        in_specs=[vmem] * 9,
        out_specs=vmem,
        compiler_params=pltpu.CompilerParams(vmem_limit_bytes=32 * 1024 * 1024),
    )(x2, w1, w2, g1, be1, g2, be2, not_top, not_bot)

    y = out2d.reshape(N, H, W, Cout)                  # lane-dense slab -> NHWC
    return jnp.transpose(y, (0, 3, 1, 2))             # NHWC -> NCHW


# ----------------------------- reference (pure JAX) ---------------------------
def _reference(x_nchw, params):
    def block(x, w9, b, g, be):
        cin = x.shape[1]
        w_oihw = jnp.transpose(w9.reshape(KH, KW, cin, -1), (3, 2, 0, 1))
        y = jax.lax.conv_general_dilated(
            x, w_oihw, (1, 1), ((1, 1), (1, 1)),
            dimension_numbers=("NCHW", "OIHW", "NCHW"))
        y = y + b.reshape(1, -1, 1, 1)
        mean = jnp.mean(y, axis=(0, 2, 3), keepdims=True)
        var = jnp.mean((y - mean) ** 2, axis=(0, 2, 3), keepdims=True)
        y = (y - mean) * jax.lax.rsqrt(var + EPS) \
            * g.reshape(1, -1, 1, 1) + be.reshape(1, -1, 1, 1)
        return jnp.maximum(y, 0.0)

    y = block(x_nchw, params["w1"], params["b1"], params["g1"], params["be1"])
    y = block(y, params["w2"], params["b2"], params["g2"], params["be2"])
    return y


# ----------------------------------- main -------------------------------------
def _init_params(key, cin, cout):
    ks = jax.random.split(key, 8)
    return {
        "w1": 0.1 * jax.random.normal(ks[0], (KH * KW, cin, cout), jnp.float32),
        "b1": 0.05 * jax.random.normal(ks[1], (1, cout), jnp.float32),
        "g1": 1.0 + 0.1 * jax.random.normal(ks[2], (1, cout), jnp.float32),
        "be1": 0.1 * jax.random.normal(ks[3], (1, cout), jnp.float32),
        "w2": 0.1 * jax.random.normal(ks[4], (KH * KW, cout, cout), jnp.float32),
        "b2": 0.05 * jax.random.normal(ks[5], (1, cout), jnp.float32),
        "g2": 1.0 + 0.1 * jax.random.normal(ks[6], (1, cout), jnp.float32),
        "be2": 0.1 * jax.random.normal(ks[7], (1, cout), jnp.float32),
    }


if __name__ == "__main__":
    key = jax.random.PRNGKey(0)
    k_x, k_p = jax.random.split(key)

    N, Cin, H, W = 2, 4, 16, 16
    Cout = 8

    x = jax.random.normal(k_x, (N, Cin, H, W), jnp.float32)   # PyTorch NCHW input
    params = _init_params(k_p, Cin, Cout)

    out = jax.block_until_ready(inconv_forward(x, params))
    ref = jax.block_until_ready(_reference(x, params))

    assert out.shape == (N, Cout, H, W), out.shape
    # bf16 MXU matmuls vs f32 reference -> loosened tolerance (BN keeps outputs ~N(0,1)).
    assert jnp.allclose(out, ref, atol=5e-2, rtol=5e-2), float(jnp.max(jnp.abs(out - ref)))

    print("KERNEL_OK")
</pallas_src>

<mosaic_0001>
module attributes {stable_mosaic.version = 11 : i64} {
  func.func @kernel(%arg0: memref<32x64xbf16, #tpu.memory_space<vmem>>, %arg1: memref<3x64x128xbf16, #tpu.memory_space<vmem>>, %arg2: memref<3x128x128xbf16, #tpu.memory_space<vmem>>, %arg3: memref<1x128xf32, #tpu.memory_space<vmem>>, %arg4: memref<1x128xf32, #tpu.memory_space<vmem>>, %arg5: memref<1x128xf32, #tpu.memory_space<vmem>>, %arg6: memref<1x128xf32, #tpu.memory_space<vmem>>, %arg7: memref<32x1xf32, #tpu.memory_space<vmem>>, %arg8: memref<32x1xf32, #tpu.memory_space<vmem>>, %arg9: memref<32x128xf32, #tpu.memory_space<vmem>>) attributes {dimension_semantics = [], scalar_prefetch = 0 : i64, scratch_operands = 0 : i64, tpu.core_type = #tpu.core_type<tc>} {
    %c0 = arith.constant 0 : index
    %c0_0 = arith.constant 0 : index
    %0 = vector.load %arg7[%c0, %c0_0] : memref<32x1xf32, #tpu.memory_space<vmem>>, vector<32x1xf32>
    %c0_1 = arith.constant 0 : index
    %c0_2 = arith.constant 0 : index
    %1 = vector.load %arg8[%c0_1, %c0_2] : memref<32x1xf32, #tpu.memory_space<vmem>>, vector<32x1xf32>
    %c0_3 = arith.constant 0 : index
    %c0_4 = arith.constant 0 : index
    %2 = vector.load %arg0[%c0_3, %c0_4] : memref<32x64xbf16, #tpu.memory_space<vmem>>, vector<32x64xbf16>
    %c0_5 = arith.constant 0 : index
    %c0_6 = arith.constant 0 : index
    %c0_7 = arith.constant 0 : index
    %3 = vector.load %arg1[%c0_5, %c0_6, %c0_7] : memref<3x64x128xbf16, #tpu.memory_space<vmem>>, vector<1x64x128xbf16>
    %4 = vector.shape_cast %3 : vector<1x64x128xbf16> to vector<64x128xbf16>
    %cst = arith.constant dense<0.000000e+00> : vector<32x128xf32>
    %5 = tpu.matmul %2, %4, %cst {dimension_numbers = #tpu.dot_dimension_numbers<[1], [0], [0], [1], [0, 0, 1, 1], [], []>} : vector<32x64xbf16>, vector<64x128xbf16>, vector<32x128xf32> -> vector<32x128xf32>
    %c1 = arith.constant 1 : index
    %c0_8 = arith.constant 0 : index
    %c0_9 = arith.constant 0 : index
    %6 = vector.load %arg1[%c1, %c0_8, %c0_9] : memref<3x64x128xbf16, #tpu.memory_space<vmem>>, vector<1x64x128xbf16>
    %7 = vector.shape_cast %6 : vector<1x64x128xbf16> to vector<64x128xbf16>
    %cst_10 = arith.constant dense<0.000000e+00> : vector<32x128xf32>
    %8 = tpu.matmul %2, %7, %cst_10 {dimension_numbers = #tpu.dot_dimension_numbers<[1], [0], [0], [1], [0, 0, 1, 1], [], []>} : vector<32x64xbf16>, vector<64x128xbf16>, vector<32x128xf32> -> vector<32x128xf32>
    %c2 = arith.constant 2 : index
    %c0_11 = arith.constant 0 : index
    %c0_12 = arith.constant 0 : index
    %9 = vector.load %arg1[%c2, %c0_11, %c0_12] : memref<3x64x128xbf16, #tpu.memory_space<vmem>>, vector<1x64x128xbf16>
    %10 = vector.shape_cast %9 : vector<1x64x128xbf16> to vector<64x128xbf16>
    %cst_13 = arith.constant dense<0.000000e+00> : vector<32x128xf32>
    %11 = tpu.matmul %2, %10, %cst_13 {dimension_numbers = #tpu.dot_dimension_numbers<[1], [0], [0], [1], [0, 0, 1, 1], [], []>} : vector<32x64xbf16>, vector<64x128xbf16>, vector<32x128xf32> -> vector<32x128xf32>
    %c1_i32 = arith.constant 1 : i32
    %12 = tpu.dynamic_rotate %5 by %c1_i32 dim 0 : vector<32x128xf32>, i32 -> vector<32x128xf32>
    %13 = vector.broadcast %0 : vector<32x1xf32> to vector<32x128xf32>
    %14 = arith.mulf %13, %12 : vector<32x128xf32>
    %15 = arith.addf %8, %14 : vector<32x128xf32>
    %c31_i32 = arith.constant 31 : i32
    %16 = tpu.dynamic_rotate %11 by %c31_i32 dim 0 : vector<32x128xf32>, i32 -> vector<32x128xf32>
    %17 = vector.broadcast %1 : vector<32x1xf32> to vector<32x128xf32>
    %18 = arith.mulf %17, %16 : vector<32x128xf32>
    %19 = arith.addf %15, %18 : vector<32x128xf32>
    %cst_14 = arith.constant dense<0.000000e+00> : vector<128xf32>
    %20 = vector.multi_reduction <add>, %19, %cst_14 [0] : vector<32x128xf32> to vector<128xf32>
    %21 = vector.shape_cast %20 : vector<128xf32> to vector<1x128xf32>
    %22 = arith.mulf %19, %19 : vector<32x128xf32>
    %cst_15 = arith.constant dense<0.000000e+00> : vector<128xf32>
    %23 = vector.multi_reduction <add>, %22, %cst_15 [0] : vector<32x128xf32> to vector<128xf32>
    %24 = vector.shape_cast %23 : vector<128xf32> to vector<1x128xf32>
    %c8_i32 = arith.constant 8 : i32
    %25 = tpu.dynamic_rotate %21 by %c8_i32 dim 1 : vector<1x128xf32>, i32 -> vector<1x128xf32>
    %26 = arith.addf %21, %25 : vector<1x128xf32>
    %c8_i32_16 = arith.constant 8 : i32
    %27 = tpu.dynamic_rotate %24 by %c8_i32_16 dim 1 : vector<1x128xf32>, i32 -> vector<1x128xf32>
    %28 = arith.addf %24, %27 : vector<1x128xf32>
    %c16_i32 = arith.constant 16 : i32
    %29 = tpu.dynamic_rotate %26 by %c16_i32 dim 1 : vector<1x128xf32>, i32 -> vector<1x128xf32>
    %30 = arith.addf %26, %29 : vector<1x128xf32>
    %c16_i32_17 = arith.constant 16 : i32
    %31 = tpu.dynamic_rotate %28 by %c16_i32_17 dim 1 : vector<1x128xf32>, i32 -> vector<1x128xf32>
    %32 = arith.addf %28, %31 : vector<1x128xf32>
    %c32_i32 = arith.constant 32 : i32
    %33 = tpu.dynamic_rotate %30 by %c32_i32 dim 1 : vector<1x128xf32>, i32 -> vector<1x128xf32>
    %34 = arith.addf %30, %33 : vector<1x128xf32>
    %c32_i32_18 = arith.constant 32 : i32
    %35 = tpu.dynamic_rotate %32 by %c32_i32_18 dim 1 : vector<1x128xf32>, i32 -> vector<1x128xf32>
    %36 = arith.addf %32, %35 : vector<1x128xf32>
    %c64_i32 = arith.constant 64 : i32
    %37 = tpu.dynamic_rotate %34 by %c64_i32 dim 1 : vector<1x128xf32>, i32 -> vector<1x128xf32>
    %38 = arith.addf %34, %37 : vector<1x128xf32>
    %c64_i32_19 = arith.constant 64 : i32
    %39 = tpu.dynamic_rotate %36 by %c64_i32_19 dim 1 : vector<1x128xf32>, i32 -> vector<1x128xf32>
    %40 = arith.addf %36, %39 : vector<1x128xf32>
    %cst_20 = arith.constant 0.001953125 : f32
    %41 = vector.broadcast %cst_20 : f32 to vector<1x128xf32>
    %42 = arith.mulf %38, %41 : vector<1x128xf32>
    %cst_21 = arith.constant 0.001953125 : f32
    %43 = vector.broadcast %cst_21 : f32 to vector<1x128xf32>
    %44 = arith.mulf %40, %43 : vector<1x128xf32>
    %45 = arith.mulf %42, %42 : vector<1x128xf32>
    %46 = arith.subf %44, %45 : vector<1x128xf32>
    %cst_22 = arith.constant 9.99999974E-6 : f32
    %47 = vector.broadcast %cst_22 : f32 to vector<1x128xf32>
    %48 = arith.addf %46, %47 : vector<1x128xf32>
    %49 = math.rsqrt %48 : vector<1x128xf32>
    %c0_23 = arith.constant 0 : index
    %c0_24 = arith.constant 0 : index
    %50 = vector.load %arg3[%c0_23, %c0_24] : memref<1x128xf32, #tpu.memory_space<vmem>>, vector<1x128xf32>
    %51 = arith.mulf %49, %50 : vector<1x128xf32>
    %c0_25 = arith.constant 0 : index
    %c0_26 = arith.constant 0 : index
    %52 = vector.load %arg4[%c0_25, %c0_26] : memref<1x128xf32, #tpu.memory_space<vmem>>, vector<1x128xf32>
    %53 = arith.mulf %42, %51 : vector<1x128xf32>
    %54 = arith.subf %52, %53 : vector<1x128xf32>
    %55 = vector.broadcast %51 : vector<1x128xf32> to vector<32x128xf32>
    %56 = arith.mulf %19, %55 : vector<32x128xf32>
    %57 = vector.broadcast %54 : vector<1x128xf32> to vector<32x128xf32>
    %58 = arith.addf %56, %57 : vector<32x128xf32>
    %cst_27 = arith.constant 0.000000e+00 : f32
    %59 = vector.broadcast %cst_27 : f32 to vector<32x128xf32>
    %60 = arith.maximumf %58, %59 : vector<32x128xf32>
    %61 = arith.truncf %60 : vector<32x128xf32> to vector<32x128xbf16>
    %c0_28 = arith.constant 0 : index
    %c0_29 = arith.constant 0 : index
    %c0_30 = arith.constant 0 : index
    %62 = vector.load %arg2[%c0_28, %c0_29, %c0_30] : memref<3x128x128xbf16, #tpu.memory_space<vmem>>, vector<1x128x128xbf16>
    %63 = vector.shape_cast %62 : vector<1x128x128xbf16> to vector<128x128xbf16>
    %cst_31 = arith.constant dense<0.000000e+00> : vector<32x128xf32>
    %64 = tpu.matmul %61, %63, %cst_31 {dimension_numbers = #tpu.dot_dimension_numbers<[1], [0], [0], [1], [0, 0, 1, 1], [], []>} : vector<32x128xbf16>, vector<128x128xbf16>, vector<32x128xf32> -> vector<32x128xf32>
    %c1_32 = arith.constant 1 : index
    %c0_33 = arith.constant 0 : index
    %c0_34 = arith.constant 0 : index
    %65 = vector.load %arg2[%c1_32, %c0_33, %c0_34] : memref<3x128x128xbf16, #tpu.memory_space<vmem>>, vector<1x128x128xbf16>
    %66 = vector.shape_cast %65 : vector<1x128x128xbf16> to vector<128x128xbf16>
    %cst_35 = arith.constant dense<0.000000e+00> : vector<32x128xf32>
    %67 = tpu.matmul %61, %66, %cst_35 {dimension_numbers = #tpu.dot_dimension_numbers<[1], [0], [0], [1], [0, 0, 1, 1], [], []>} : vector<32x128xbf16>, vector<128x128xbf16>, vector<32x128xf32> -> vector<32x128xf32>
    %c2_36 = arith.constant 2 : index
    %c0_37 = arith.constant 0 : index
    %c0_38 = arith.constant 0 : index
    %68 = vector.load %arg2[%c2_36, %c0_37, %c0_38] : memref<3x128x128xbf16, #tpu.memory_space<vmem>>, vector<1x128x128xbf16>
    %69 = vector.shape_cast %68 : vector<1x128x128xbf16> to vector<128x128xbf16>
    %cst_39 = arith.constant dense<0.000000e+00> : vector<32x128xf32>
    %70 = tpu.matmul %61, %69, %cst_39 {dimension_numbers = #tpu.dot_dimension_numbers<[1], [0], [0], [1], [0, 0, 1, 1], [], []>} : vector<32x128xbf16>, vector<128x128xbf16>, vector<32x128xf32> -> vector<32x128xf32>
    %c1_i32_40 = arith.constant 1 : i32
    %71 = tpu.dynamic_rotate %64 by %c1_i32_40 dim 0 : vector<32x128xf32>, i32 -> vector<32x128xf32>
    %72 = vector.broadcast %0 : vector<32x1xf32> to vector<32x128xf32>
    %73 = arith.mulf %72, %71 : vector<32x128xf32>
    %74 = arith.addf %67, %73 : vector<32x128xf32>
    %c31_i32_41 = arith.constant 31 : i32
    %75 = tpu.dynamic_rotate %70 by %c31_i32_41 dim 0 : vector<32x128xf32>, i32 -> vector<32x128xf32>
    %76 = vector.broadcast %1 : vector<32x1xf32> to vector<32x128xf32>
    %77 = arith.mulf %76, %75 : vector<32x128xf32>
    %78 = arith.addf %74, %77 : vector<32x128xf32>
    %cst_42 = arith.constant dense<0.000000e+00> : vector<128xf32>
    %79 = vector.multi_reduction <add>, %78, %cst_42 [0] : vector<32x128xf32> to vector<128xf32>
    %80 = vector.shape_cast %79 : vector<128xf32> to vector<1x128xf32>
    %81 = arith.mulf %78, %78 : vector<32x128xf32>
    %cst_43 = arith.constant dense<0.000000e+00> : vector<128xf32>
    %82 = vector.multi_reduction <add>, %81, %cst_43 [0] : vector<32x128xf32> to vector<128xf32>
    %83 = vector.shape_cast %82 : vector<128xf32> to vector<1x128xf32>
    %c8_i32_44 = arith.constant 8 : i32
    %84 = tpu.dynamic_rotate %80 by %c8_i32_44 dim 1 : vector<1x128xf32>, i32 -> vector<1x128xf32>
    %85 = arith.addf %80, %84 : vector<1x128xf32>
    %c8_i32_45 = arith.constant 8 : i32
    %86 = tpu.dynamic_rotate %83 by %c8_i32_45 dim 1 : vector<1x128xf32>, i32 -> vector<1x128xf32>
    %87 = arith.addf %83, %86 : vector<1x128xf32>
    %c16_i32_46 = arith.constant 16 : i32
    %88 = tpu.dynamic_rotate %85 by %c16_i32_46 dim 1 : vector<1x128xf32>, i32 -> vector<1x128xf32>
    %89 = arith.addf %85, %88 : vector<1x128xf32>
    %c16_i32_47 = arith.constant 16 : i32
    %90 = tpu.dynamic_rotate %87 by %c16_i32_47 dim 1 : vector<1x128xf32>, i32 -> vector<1x128xf32>
    %91 = arith.addf %87, %90 : vector<1x128xf32>
    %c32_i32_48 = arith.constant 32 : i32
    %92 = tpu.dynamic_rotate %89 by %c32_i32_48 dim 1 : vector<1x128xf32>, i32 -> vector<1x128xf32>
    %93 = arith.addf %89, %92 : vector<1x128xf32>
    %c32_i32_49 = arith.constant 32 : i32
    %94 = tpu.dynamic_rotate %91 by %c32_i32_49 dim 1 : vector<1x128xf32>, i32 -> vector<1x128xf32>
    %95 = arith.addf %91, %94 : vector<1x128xf32>
    %c64_i32_50 = arith.constant 64 : i32
    %96 = tpu.dynamic_rotate %93 by %c64_i32_50 dim 1 : vector<1x128xf32>, i32 -> vector<1x128xf32>
    %97 = arith.addf %93, %96 : vector<1x128xf32>
    %c64_i32_51 = arith.constant 64 : i32
    %98 = tpu.dynamic_rotate %95 by %c64_i32_51 dim 1 : vector<1x128xf32>, i32 -> vector<1x128xf32>
    %99 = arith.addf %95, %98 : vector<1x128xf32>
    %cst_52 = arith.constant 0.001953125 : f32
    %100 = vector.broadcast %cst_52 : f32 to vector<1x128xf32>
    %101 = arith.mulf %97, %100 : vector<1x128xf32>
    %cst_53 = arith.constant 0.001953125 : f32
    %102 = vector.broadcast %cst_53 : f32 to vector<1x128xf32>
    %103 = arith.mulf %99, %102 : vector<1x128xf32>
    %104 = arith.mulf %101, %101 : vector<1x128xf32>
    %105 = arith.subf %103, %104 : vector<1x128xf32>
    %cst_54 = arith.constant 9.99999974E-6 : f32
    %106 = vector.broadcast %cst_54 : f32 to vector<1x128xf32>
    %107 = arith.addf %105, %106 : vector<1x128xf32>
    %108 = math.rsqrt %107 : vector<1x128xf32>
    %c0_55 = arith.constant 0 : index
    %c0_56 = arith.constant 0 : index
    %109 = vector.load %arg5[%c0_55, %c0_56] : memref<1x128xf32, #tpu.memory_space<vmem>>, vector<1x128xf32>
    %110 = arith.mulf %108, %109 : vector<1x128xf32>
    %c0_57 = arith.constant 0 : index
    %c0_58 = arith.constant 0 : index
    %111 = vector.load %arg6[%c0_57, %c0_58] : memref<1x128xf32, #tpu.memory_space<vmem>>, vector<1x128xf32>
    %112 = arith.mulf %101, %110 : vector<1x128xf32>
    %113 = arith.subf %111, %112 : vector<1x128xf32>
    %114 = vector.broadcast %110 : vector<1x128xf32> to vector<32x128xf32>
    %115 = arith.mulf %78, %114 : vector<32x128xf32>
    %116 = vector.broadcast %113 : vector<1x128xf32> to vector<32x128xf32>
    %117 = arith.addf %115, %116 : vector<32x128xf32>
    %cst_59 = arith.constant 0.000000e+00 : f32
    %118 = vector.broadcast %cst_59 : f32 to vector<32x128xf32>
    %119 = arith.maximumf %117, %118 : vector<32x128xf32>
    %c0_60 = arith.constant 0 : index
    %c0_61 = arith.constant 0 : index
    %120 = vector.load %arg9[%c0_60, %c0_61] : memref<32x128xf32, #tpu.memory_space<vmem>>, vector<32x128xf32>
    tpu.vector_store %arg9[%c0_60, %c0_61], %119 {strides = array<i32>} : memref<32x128xf32, #tpu.memory_space<vmem>>, vector<32x128xf32>,
    return
  }
}

</mosaic_0001>

<bundles_post_ra>
// kernel: tpu_custom_call.1
= control target key start
LH: loop header
LB: loop body
LE: loop exit
PB: predicated region body
PF: predicated region fallthrough
CT: control target
= control target key end

     0   :  { %14 = vsyncpa [#allocation3], 0  ;;  %s1555_s0 = inlined_call_operand.vmem [shape: bf16[32,64], index: 0, kind: input, shape index: {}]   ;;  %s1556_s1 = inlined_call_operand.hbm [shape: bf16[3,64,128], index: 1, kind: input, shape index: {}]   ;;  %s1557_s2 = inlined_call_operand.hbm [shape: bf16[3,128,128], index: 2, kind: input, shape index: {}]   ;;  %s1558_s3 = inlined_call_operand.vmem [shape: f32[1,128], index: 3, kind: input, shape index: {}]   ;;  %s1559_s4 = inlined_call_operand.vmem [shape: f32[1,128], index: 4, kind: input, shape index: {}]   ;;  %s1560_s5 = inlined_call_operand.vmem [shape: f32[1,128], index: 5, kind: input, shape index: {}]   ;;  %s1561_s6 = inlined_call_operand.vmem [shape: f32[1,128], index: 6, kind: input, shape index: {}]   ;;  %s1562_s7 = inlined_call_operand.vmem [shape: f32[32,1], index: 7, kind: input, shape index: {}]   ;;  %s1563_s8 = inlined_call_operand.vmem [shape: f32[32,1], index: 8, kind: input, shape index: {}]   ;;  %s1564_s9 = inlined_call_operand.hbm [shape: f32[32,128], index: 9, kind: output, shape index: {}]  }
   0x1   :  { %15 = vsyncpa [#allocation6], 0 }
   0x2   :  { %16 = vsyncpa [#allocation4], 0  ;;  %s1273_s30 = smov [#allocation2]   ;;  %s1201_s13 = scalar_lea.hbm %s1556_s1, 1536 }
   0x3   :  { %s24_s10 = sshll.u32 %s1273_s30, 4  ;;  %p1202_p0 = scmp.ne.s32.totalorder %s1556_s1, %s1201_s13  ;;  %s25_s10 = int_to_ptr.vmem [resolvable:$true] %s24_s10 }
   0x4   :  { %p1205_p1 = scmp.lt.u32.totalorder %s1201_s13, %s1556_s1 }
   0x6   :  { %p1207_p2 = pnand %p1205_p1, %p1202_p0 }
   0x8   :  { %1210 = shalt.err (!%p1207_p2)
}
   0x9   :  { %s1211_s18 = scalar_lea.vmem %s25_s10, 1536  ;;  %p1216_p4 = scmp.lt.s32.totalorder %s25_s10, %s25_s10 }
   0xa   :  { %p1212_p3 = scmp.ne.s32.totalorder %s25_s10, %s1211_s18  ;;  %p1217_p5 = scmp.lt.s32.totalorder %s1211_s18, %s1211_s18 }
   0xc   :  { %p1218_p6 = por %p1217_p5, %p1216_p4 }
   0xe   :  { %p1219_p7 = pnand %p1218_p6, %p1212_p3 }
  0x10   :  { %1222 = shalt.err (!%p1219_p7)
}
  0x11   :  { %s1274_s19 = smov 64   ;;  %s1275_s20 = smov 4  }
  0x12   :  { %30 = dma.hbm_to_vmem [thread:$0]  %s1556_s1, 1536, %s25_s10, [#allocation3], %s1274_s19, %s1274_s19, %s1275_s20  }
  0x13   :  { %s1276_s23 = smov [#allocation5]   ;;  %s1223_s27 = scalar_lea.hbm %s1557_s2, 3072 }
  0x14   :  { %s36_s24 = sshll.u32 %s1276_s23, 4  ;;  %p1224_p8 = scmp.ne.s32.totalorder %s1557_s2, %s1223_s27  ;;  %s37_s24 = int_to_ptr.vmem [resolvable:$true] %s36_s24 }
  0x15   :  { %p1227_p9 = scmp.lt.u32.totalorder %s1223_s27, %s1557_s2 }
  0x17   :  { %p1229_p10 = pnand %p1227_p9, %p1224_p8 }
  0x19   :  { %1232 = shalt.err (!%p1229_p10)
}
  0x1a   :  { %s1233_s12 = scalar_lea.vmem %s37_s24, 3072  ;;  %p1238_p12 = scmp.lt.s32.totalorder %s37_s24, %s37_s24 }
  0x1b   :  { %p1234_p11 = scmp.ne.s32.totalorder %s37_s24, %s1233_s12  ;;  %p1239_p13 = scmp.lt.s32.totalorder %s1233_s12, %s1233_s12 }
  0x1d   :  { %p1240_p0 = por %p1239_p13, %p1238_p12 }
  0x1f   :  { %p1241_p1 = pnand %p1240_p0, %p1234_p11 }
  0x21   :  { %1244 = shalt.err (!%p1241_p1)
}
  0x22   :  { %42 = dma.hbm_to_vmem [thread:$0]  %s1557_s2, 3072, %s37_s24, [#allocation6], %s1274_s19, %s1274_s19, %s1275_s20  }
  0x23   :  { %1267 = dma.done.wait [#allocation3], 1536  }
  0x24   :  { %1268 = vsyncadd [#allocation3], 4294965760 }
  0x25   :  { %1269 = dma.done.wait [#allocation6], 3072  }
  0x26   :  { %1270 = vsyncadd [#allocation6], 4294964224  ;;  %v1277_v0 = vmov 0   ;;  %v1159_v1 = vld [vmem:[#allocation2] sm:$0xff]   ;;  %v1161_v3 = vld [vmem:[#allocation2 + $0x8] sm:$0xff]   ;;  %vm116_vm0 = vcmask 523264   ;;  %v267_v24 = vlaneseq }
  0x27   :  { %1158 = vset.pattern.permute.xlu1 %v1277_v0  ;;  %1157 = vset.pattern.permute.xlu0 %v1277_v0  ;;  %v1160_v2 = vld [vmem:[#allocation2 + $0x40] sm:$0xff]   ;;  %v1162_v4 = vld [vmem:[#allocation2 + $0x48] sm:$0xff]   ;;  %v1163_v5 = vld [vmem:[#allocation2 + $0x10] sm:$0xff]   ;;  %s1280_s12 = smov 32  }
  0x28   :  { %1051 = vmatprep.subr.bf16.mxu0 %v1159_v1  ;;  %1063 = vmatprep.subr.bf16.mxu1 %v1160_v2  ;;  %v1164_v6 = vld [vmem:[#allocation2 + $0x50] sm:$0xff]   ;;  %v1166_v7 = vld [vmem:[%s1555_s0] sm:$0xff]   ;;  %v1165_v8 = vld [vmem:[#allocation2 + $0x18] sm:$0xff]   ;;  %v1399_v25 = vshrl.u32 %v267_v24, 7 }
  0x29   :  { %1052 = vmatpush3.bf16.msra.mxu0 %v1159_v1  ;;  %1064 = vmatpush3.bf16.msra.mxu1 %v1160_v2  ;;  %v1167_v9 = vld [vmem:[#allocation2 + $0x58] sm:$0xff]   ;;  %v1169_v10 = vld [vmem:[#allocation2 + $0x20] sm:$0xff]   ;;  %v1168_v11 = vld [vmem:[%s1555_s0 + $0x8] sm:$0xff]  }
  0x2a   :  { %1053 = vmatprep.subr.bf16.mxu0 %v1161_v3  ;;  %1065 = vmatprep.subr.bf16.mxu1 %v1162_v4  ;;  %v64_v12 = vld [vmem:[%s1562_s7 + $0x10] sm:$0xff]  ;;  %v62_v13 = vld [vmem:[%s1562_s7] sm:$0xff]  ;;  %v1170_v14 = vld [vmem:[#allocation2 + $0x28] sm:$0xff]   ;;  %vm269_vm1 = vcmp.lt.s32.totalorder %v1399_v25, 1  ;;  %vm375_vm2 = vcmp.lt.s32.totalorder %v1399_v25, 7 }
  0x2b   :  { %1059 = vmatprep.mubr.msk.bf16.mxu0 %vm116_vm0, %v1166_v7  ;;  %1071 = vmatprep.mubr.msk.bf16.mxu1 %vm116_vm0, %v1166_v7  ;;  %v66_v15 = vld [vmem:[%s1563_s8] sm:$0xff]  ;;  %v63_v16 = vld [vmem:[%s1562_s7 + $0x8] sm:$0xff]  ;;  %v1171_v17 = vld [vmem:[#allocation2 + $0x30] sm:$0xff]  }
  0x2c   :  { %286 = vperm.xlu1 %1158, %v64_v12   ;;  %276 = vperm.xlu0 %1157, %v62_v13   ;;  %v65_v18 = vld [vmem:[%s1562_s7 + $0x18] sm:$0xff]  ;;  %v67_v19 = vld [vmem:[%s1563_s8 + $0x8] sm:$0xff]  ;;  %v68_v21 = vld [vmem:[%s1563_s8 + $0x10] sm:$0xff]  ;;  %s1278_s7 = smov 8  }
  0x2d   :  { %1054 = vmatpush3.bf16.msra.mxu0 %v1161_v3  ;;  %1066 = vmatpush3.bf16.msra.mxu1 %v1162_v4  ;;  %v1172_v20 = vld [vmem:[#allocation2 + $0x38] sm:$0xff]  }
  0x2e   :  { %1055 = vmatprep.subr.bf16.mxu0 %v1163_v5  ;;  %1067 = vmatprep.subr.bf16.mxu1 %v1164_v6  ;;  %v69_v22 = vld [vmem:[%s1563_s8 + $0x18] sm:$0xff]  ;;  %s1279_s8 = smov 16  }
  0x30   :  { %382 = vperm.xlu1 %1158, %v66_v15   ;;  %281 = vperm.xlu0 %1157, %v63_v16  }
  0x31   :  { %1056 = vmatpush3.bf16.msra.mxu0 %v1163_v5  ;;  %1068 = vmatpush3.bf16.msra.mxu1 %v1164_v6 }
  0x32   :  { %1057 = vmatprep.subr.bf16.mxu0 %v1165_v8  ;;  %1069 = vmatprep.subr.bf16.mxu1 %v1167_v9 }
  0x34   :  { %291 = vperm.xlu1 %1158, %v65_v18   ;;  %387 = vperm.xlu0 %1157, %v67_v19  }
  0x35   :  { %1058 = vmatpush3.bf16.msra.mxu0 %v1165_v8  ;;  %1070 = vmatpush3.bf16.msra.mxu1 %v1167_v9 }
  0x36   :  { %1075 = vmatprep.subr.bf16.mxu0 %v1169_v10 }
  0x38   :  { %1060 = vmatmul.mubr.msk.bf16.vlgmr.msra.gmra.mrb[0].mxu0 %vm116_vm0, %v1168_v11  ;;  %1072 = vmatmul.mubr.msk.bf16.vlgmr.msra.gmra.mrb[0].mxu1 %vm116_vm0, %v1168_v11 }
  0x39   :  { %1076 = vmatpush3.bf16.msra.mxu0 %v1169_v10  ;;  %1083 = vmatprep.mubr.msk.bf16.mxu0 %vm116_vm0, %v1166_v7 }
  0x3a   :  { %1077 = vmatprep.subr.bf16.mxu0 %v1170_v14  ;;  %392 = vperm.xlu0 %1157, %v68_v21  }
  0x3b   :  { %397 = vperm.xlu1 %1158, %v69_v22  }
  0x3d   :  { %1078 = vmatpush3.bf16.msra.mxu0 %v1170_v14 }
  0x3e   :  { %1079 = vmatprep.subr.bf16.mxu0 %v1171_v17 }
  0x41   :  { %1080 = vmatpush3.bf16.msra.mxu0 %v1171_v17 }
  0x42   :  { %1081 = vmatprep.subr.bf16.mxu0 %v1172_v20 }
  0x45   :  { %1082 = vmatpush3.bf16.msra.mxu0 %v1172_v20 }
  0x48   :  { %1084 = vmatmul.mubr.msk.bf16.vlgmr.msra.gmra.mrb[4].mxu0 %vm116_vm0, %v1168_v11 }
  0xab   :  { %v1397_v23 = vpop.permute.xlu0 %276  ;;  %v1401_v26 = vpop.permute.xlu1 %286 }
  0xaf   :  { %v1403_v28 = vpop.permute.xlu0 %281  ;;  %v1411_v46 = vpop.permute.xlu1 %382 }
  0xb3   :  { %v1423_v52 = vpop.permute.xlu0 %387  ;;  %v1427_v54 = vpop.permute.xlu1 %291 }
  0xb9   :  { %v1429_v55 = vpop.permute.xlu0 %392 }
  0xba   :  { %v1432_v57 = vpop.permute.xlu1 %397 }
 0x10b   :  { %v1061_v27 = vpop.f32.mrb[0].mxu0  ;;  %v1073_v31 = vpop.f32.mrb[0].mxu1 }
 0x10c   :  { %v265_v29 = vrot.slane %v1061_v27, 7  ;;  %v157_v30 = vpop.f32.mrb[1].mxu0  ;;  %v373_v34 = vrot.slane %v1073_v31, 1  ;;  %v248_v35 = vpop.f32.mrb[1].mxu1 }
 0x10d   :  { %v263_v32 = vrot.slane %v157_v30, 7  ;;  %v1062_v33 = vpop.f32.mrb[2].mxu0  ;;  %v371_v38 = vrot.slane %v248_v35, 1  ;;  %v1074_v39 = vpop.f32.mrb[2].mxu1 }
 0x10e   :  { %v266_v36 = vrot.slane %v1062_v33, 7  ;;  %v160_v37 = vpop.f32.mrb[3].mxu0  ;;  %v374_v41 = vrot.slane %v1074_v39, 1  ;;  %v251_v42 = vpop.f32.mrb[3].mxu1 }
 0x10f   :  { %v264_v40 = vrot.slane %v160_v37, 7  ;;  %v372_v44 = vrot.slane %v251_v42, 1 }
 0x110   :  { %v270_v43 = vsel %vm269_vm1, %v265_v29, %v266_v36  ;;  %v273_v45 = vsel %vm269_vm1, %v266_v36, %v263_v32  ;;  %v376_v47 = vsel %vm375_vm2, %v373_v34, %v374_v41  ;;  %v379_v48 = vsel %vm375_vm2, %v374_v41, %v371_v38 }
 0x111   :  { %v271_v49 = vsel %vm269_vm1, %v264_v40, %v265_v29  ;;  %v377_v50 = vsel %vm375_vm2, %v372_v44, %v373_v34  ;;  %v378_v51 = vsel %vm375_vm2, %v371_v38, %v372_v44  ;;  %v272_v53 = vsel %vm269_vm1, %v263_v32, %v264_v40 }
 0x112   :  { %v296_v56 = vmul.f32 %v1401_v26, %v271_v49  ;;  %v294_v59 = vmul.f32 %v1397_v23, %v273_v45  ;;  %v297_v60 = vmul.f32 %v1427_v54, %v270_v43  ;;  %v402_v61 = vmul.f32 %v1429_v55, %v376_v47  ;;  %v1174_v49 = vld [vmem:[#allocation5 + $0x80] sm:$0xff]  }
 0x113   :  { %v400_v1 = vmul.f32 %v1411_v46, %v378_v51  ;;  %v295_v3 = vmul.f32 %v1403_v28, %v272_v53  ;;  %v403_v4 = vmul.f32 %v1432_v57, %v379_v48  ;;  %v401_v10 = vmul.f32 %v1423_v52, %v377_v50  ;;  %v1173_v48 = vld [vmem:[#allocation5] sm:$0xff]   ;;  %1107 = vmatprep.subr.bf16.mxu0 %v1174_v49  ;;  %v1175_v50 = vld [vmem:[#allocation5 + $0x8] sm:$0xff]  }
 0x114   :  { %1087 = vmatprep.subr.bf16.mxu1 %v1173_v48  ;;  %1108 = vmatpush3.bf16.msra.mxu0 %v1174_v49  ;;  %v1176_v51 = vld [vmem:[#allocation5 + $0x88] sm:$0xff]  }
 0x115   :  { %1088 = vmatpush3.bf16.msra.mxu1 %v1173_v48  ;;  %1109 = vmatprep.subr.bf16.mxu0 %v1176_v51 }
 0x116   :  { %1089 = vmatprep.subr.bf16.mxu1 %v1175_v50 }
 0x118   :  { %1110 = vmatpush3.bf16.msra.mxu0 %v1176_v51  ;;  %v1195_v51 = vld [vmem:[#allocation5 + $0x70] sm:$0xff]  }
 0x119   :  { %1090 = vmatpush3.bf16.msra.mxu1 %v1175_v50  ;;  %v1190_v50 = vld [vmem:[#allocation5 + $0x48] sm:$0xff]  }
 0x11b   :  { %v1085_v58 = vpop.f32.mrb[4].mxu0 }
 0x11c   :  { %v365_v62 = vadd.f32 %v1085_v58, %v296_v56  ;;  %v356_v63 = vpop.f32.mrb[5].mxu0  ;;  %v1177_v58 = vld [vmem:[#allocation5 + $0x10] sm:$0xff]  }
 0x11d   :  { %v357_v0 = vadd.f32 %v356_v63, %v294_v59  ;;  %v1086_v2 = vpop.f32.mrb[6].mxu0  ;;  %1091 = vmatprep.subr.bf16.mxu1 %v1177_v58  ;;  %v1180_v63 = vld [vmem:[#allocation5 + $0x98] sm:$0xff]  }
 0x11e   :  { %v1440_v5 = vadd.f32 %v402_v61, %v365_v62  ;;  %v368_v6 = vadd.f32 %v1086_v2, %v297_v60  ;;  %v359_v7 = vpop.f32.mrb[7].mxu0  ;;  %v1178_v60 = vld [vmem:[#allocation5 + $0x90] sm:$0xff]   ;;  %1092 = vmatpush3.bf16.msra.mxu1 %v1177_v58  ;;  %v1179_v62 = vld [vmem:[#allocation5 + $0x18] sm:$0xff]   ;;  %v1183_v2 = vld [vmem:[#allocation5 + $0x28] sm:$0xff]  }
 0x11f   :  { %v1442_v8 = vadd.f32 %v400_v1, %v357_v0  ;;  %v360_v9 = vadd.f32 %v359_v7, %v295_v3  ;;  %1111 = vmatprep.subr.bf16.mxu0 %v1178_v60  ;;  %1093 = vmatprep.subr.bf16.mxu1 %v1179_v62  ;;  %v1181_v0 = vld [vmem:[#allocation5 + $0x20] sm:$0xff]   ;;  %v1184_v3 = vld [vmem:[#allocation5 + $0xa8] sm:$0xff]   ;;  %v1187_v7 = vld [vmem:[#allocation5 + $0x38] sm:$0xff]  }
 0x120   :  { %v1445_v11 = vadd.f32 %v403_v4, %v368_v6  ;;  %v419_v16 = vmul.f32 %v1440_v5, %v1440_v5  ;;  %1112 = vmatpush3.bf16.msra.mxu0 %v1178_v60  ;;  %v1182_v1 = vld [vmem:[#allocation5 + $0xa0] sm:$0xff]   ;;  %v1185_v4 = vld [vmem:[#allocation5 + $0x30] sm:$0xff]  }
 0x121   :  { %v1447_v12 = vadd.f32 %v401_v10, %v360_v9  ;;  %v417_v13 = vmul.f32 %v1442_v8, %v1442_v8  ;;  %1113 = vmatprep.subr.bf16.mxu0 %v1180_v63  ;;  %v1186_v6 = vld [vmem:[#allocation5 + $0xb0] sm:$0xff]   ;;  %v1188_v9 = vld [vmem:[#allocation5 + $0xb8] sm:$0xff]   ;;  %v1189_v10 = vld [vmem:[#allocation5 + $0x40] sm:$0xff]  }
 0x122   :  { %v420_v19 = vmul.f32 %v1445_v11, %v1445_v11  ;;  %1094 = vmatpush3.bf16.msra.mxu1 %v1179_v62 }
 0x123   :  { %v408_v14 = vadd.f32 %v1447_v12, %v1442_v8  ;;  %v418_v15 = vmul.f32 %v1447_v12, %v1447_v12  ;;  %1095 = vmatprep.subr.bf16.mxu1 %v1181_v0 }
 0x124   :  { %1114 = vmatpush3.bf16.msra.mxu0 %v1180_v63 }
 0x125   :  { %v409_v17 = vadd.f32 %v408_v14, %v1440_v5  ;;  %v421_v18 = vadd.f32 %v418_v15, %v417_v13  ;;  %1115 = vmatprep.subr.bf16.mxu0 %v1182_v1 }
 0x126   :  { %1096 = vmatpush3.bf16.msra.mxu1 %v1181_v0 }
 0x127   :  { %v422_v20 = vadd.f32 %v421_v18, %v419_v16  ;;  %v410_v21 = vadd.f32 %v409_v17, %v1445_v11  ;;  %1097 = vmatprep.subr.bf16.mxu1 %v1183_v2 }
 0x128   :  { %1116 = vmatpush3.bf16.msra.mxu0 %v1182_v1 }
 0x129   :  { %v411_v22 = vrot.slane %v410_v21, 4  ;;  %v423_v24 = vadd.f32 %v422_v20, %v420_v19  ;;  %1117 = vmatprep.subr.bf16.mxu0 %v1184_v3 }
 0x12a   :  { %1098 = vmatpush3.bf16.msra.mxu1 %v1183_v2 }
 0x12b   :  { %v412_v27 = vadd.f32 %v411_v22, %v410_v21  ;;  %v424_v29 = vrot.slane %v423_v24, 4  ;;  %1099 = vmatprep.subr.bf16.mxu1 %v1185_v4  ;;  %v460_v22 = vld [vmem:[%s1558_s3] sm:$0x1] }
 0x12c   :  { %1118 = vmatpush3.bf16.msra.mxu0 %v1184_v3 }
 0x12d   :  { %v413_v30 = vrot.slane %v412_v27, 2  ;;  %v425_v31 = vadd.f32 %v424_v29, %v423_v24  ;;  %1119 = vmatprep.subr.bf16.mxu0 %v1186_v6  ;;  %v1473_v24 = vsub.s32 0, %v1399_v25 }
 0x12e   :  { %1100 = vmatpush3.bf16.msra.mxu1 %v1185_v4 }
 0x12f   :  { %v414_v32 = vadd.f32 %v413_v30, %v412_v27  ;;  %v426_v33 = vrot.slane %v425_v31, 2  ;;  %1101 = vmatprep.subr.bf16.mxu1 %v1187_v7  ;;  %v462_v30 = vld [vmem:[%s1559_s4] sm:$0x1] }
 0x130   :  { %1120 = vmatpush3.bf16.msra.mxu0 %v1186_v6 }
 0x131   :  { %v415_v34 = vrot.slane %v414_v32, 1  ;;  %v427_v35 = vadd.f32 %v426_v33, %v425_v31  ;;  %1121 = vmatprep.subr.bf16.mxu0 %v1188_v9 }
 0x132   :  { %1102 = vmatpush3.bf16.msra.mxu1 %v1187_v7 }
 0x133   :  { %v416_v36 = vadd.f32 %v415_v34, %v414_v32  ;;  %v428_v37 = vrot.slane %v427_v35, 1  ;;  %1127 = vmatprep.subr.bf16.mxu1 %v1189_v10 }
 0x134   :  { %1122 = vmatpush3.bf16.msra.mxu0 %v1188_v9 }
 0x135   :  { %430 = vrot.lane.b32.xlu0 %v416_v36, %s1278_s7  ;;  %v429_v38 = vadd.f32 %v428_v37, %v427_v35 }
 0x137   :  { %433 = vrot.lane.b32.xlu1 %v429_v38, %s1278_s7 }
 0x1a7   :  { %v431_v39 = vpop.permute.xlu0 %430 }
 0x1a8   :  { %v432_v40 = vadd.f32 %v431_v39, %v416_v36 }
 0x1a9   :  { %v434_v41 = vpop.permute.xlu1 %433 }
 0x1aa   :  { %v435_v42 = vadd.f32 %v434_v41, %v429_v38  ;;  %436 = vrot.lane.b32.xlu0 %v432_v40, %s1279_s8 }
 0x1ac   :  { %439 = vrot.lane.b32.xlu1 %v435_v42, %s1279_s8 }
 0x21c   :  { %v437_v43 = vpop.permute.xlu0 %436 }
 0x21d   :  { %v438_v44 = vadd.f32 %v437_v43, %v432_v40 }
 0x21e   :  { %v440_v45 = vpop.permute.xlu1 %439 }
 0x21f   :  { %v441_v47 = vadd.f32 %v440_v45, %v435_v42  ;;  %442 = vrot.lane.b32.xlu0 %v438_v44, %s1280_s12 }
 0x221   :  { %445 = vrot.lane.b32.xlu1 %v441_v47, %s1280_s12 }
 0x291   :  { %v443_v53 = vpop.permute.xlu0 %442 }
 0x292   :  { %v444_v56 = vadd.f32 %v443_v53, %v438_v44  ;;  %v1196_v53 = vld [vmem:[#allocation5 + $0x78] sm:$0xff]  }
 0x293   :  { %v446_v59 = vpop.permute.xlu1 %445 }
 0x294   :  { %v447_v61 = vadd.f32 %v446_v59, %v441_v47  ;;  %448 = vrot.lane.b32.xlu0 %v444_v56, %s1274_s19 }
 0x296   :  { %451 = vrot.lane.b32.xlu1 %v447_v61, %s1274_s19 }
 0x306   :  { %v449_v13 = vpop.permute.xlu0 %448 }
 0x307   :  { %v450_v14 = vadd.f32 %v449_v13, %v444_v56 }
 0x308   :  { %v452_v15 = vpop.permute.xlu1 %451 }
 0x309   :  { %v454_v16 = vmul.f32 0.001953125, %v450_v14  ;;  %v453_v17 = vadd.f32 %v452_v15, %v447_v61 }
 0x30b   :  { %v456_v18 = vmul.f32 %v454_v16, %v454_v16  ;;  %v455_v19 = vmul.f32 0.001953125, %v453_v17 }
 0x30d   :  { %v457_v20 = vsub.f32 %v455_v19, %v456_v18 }
 0x30f   :  { %v458_v21 = vadd.f32 1e-05, %v457_v20 }
 0x311   :  { %1197 = vrsqrt.f32 %v458_v21 }
 0x31b   :  { %v1198_v27 = vpop.eup %1197 }
 0x31c   :  { %v461_v29 = vmul.f32 %v1198_v27, %v460_v22 }
 0x31e   :  { %v463_v31 = vmul.f32 %v461_v29, %v454_v16  ;;  %v468_v32 = vrot.slane %v461_v29, %v1473_v24 }
 0x320   :  { %v464_v33 = vsub.f32 %v462_v30, %v463_v31  ;;  %v469_v34 = vmul.f32 %v468_v32, %v1442_v8  ;;  %v470_v35 = vmul.f32 %v468_v32, %v1447_v12  ;;  %v471_v37 = vmul.f32 %v468_v32, %v1440_v5  ;;  %v1191_v5 = vld [vmem:[#allocation5 + $0x50] sm:$0xff]   ;;  %v1192_v8 = vld [vmem:[#allocation5 + $0x58] sm:$0xff]   ;;  %v1194_v12 = vld [vmem:[#allocation5 + $0x68] sm:$0xff]  }
 0x321   :  { %v472_v38 = vmul.f32 %v468_v32, %v1445_v11  ;;  %v1193_v11 = vld [vmem:[#allocation5 + $0x60] sm:$0xff]  }
 0x322   :  { %v477_v36 = vrot.slane %v464_v33, %v1473_v24 }
 0x324   :  { %v479_v39 = vadd.f32 %v477_v36, %v469_v34  ;;  %v480_v40 = vadd.f32 %v477_v36, %v470_v35  ;;  %v481_v41 = vadd.f32 %v477_v36, %v471_v37  ;;  %v482_v42 = vadd.f32 %v477_v36, %v472_v38 }
 0x326   :  { %v483_v43 = vmax.f32 %v479_v39, 0.0  ;;  %v484_v44 = vmax.f32 %v480_v40, 0.0  ;;  %v485_v45 = vmax.f32 %v481_v41, 0.0  ;;  %v486_v47 = vmax.f32 %v482_v42, 0.0 }
 0x328   :  { %v487_v48 = vpack.c.bf16 %v484_v44, %v483_v43  ;;  %v488_v49 = vpack.c.bf16 %v486_v47, %v485_v45 }
 0x32a   :  { %1103 = vmatprep.mubr.bf16.mxu1 %v487_v48  ;;  %1123 = vmatprep.mubr.bf16.mxu0 %v487_v48 }
 0x32b   :  { %1104 = vmatmul.mubr.bf16.vlgmr.msra.gmra.mrb[4].mxu1 %v488_v49  ;;  %1124 = vmatmul.mubr.bf16.vlgmr.msra.gmra.mrb[8].mxu0 %v488_v49 }
 0x32c   :  { %1128 = vmatpush3.bf16.msra.mxu1 %v1189_v10  ;;  %1143 = vmatprep.mubr.bf16.mxu1 %v487_v48 }
 0x32d   :  { %1129 = vmatprep.subr.bf16.mxu1 %v1190_v50 }
 0x330   :  { %1130 = vmatpush3.bf16.msra.mxu1 %v1190_v50 }
 0x331   :  { %1131 = vmatprep.subr.bf16.mxu1 %v1191_v5 }
 0x334   :  { %1132 = vmatpush3.bf16.msra.mxu1 %v1191_v5 }
 0x335   :  { %1133 = vmatprep.subr.bf16.mxu1 %v1192_v8 }
 0x338   :  { %1134 = vmatpush3.bf16.msra.mxu1 %v1192_v8 }
 0x339   :  { %1135 = vmatprep.subr.bf16.mxu1 %v1193_v11 }
 0x33c   :  { %1136 = vmatpush3.bf16.msra.mxu1 %v1193_v11 }
 0x33d   :  { %1137 = vmatprep.subr.bf16.mxu1 %v1194_v12 }
 0x340   :  { %1138 = vmatpush3.bf16.msra.mxu1 %v1194_v12 }
 0x341   :  { %1139 = vmatprep.subr.bf16.mxu1 %v1195_v51 }
 0x344   :  { %1140 = vmatpush3.bf16.msra.mxu1 %v1195_v51 }
 0x345   :  { %1141 = vmatprep.subr.bf16.mxu1 %v1196_v53 }
 0x348   :  { %1142 = vmatpush3.bf16.msra.mxu1 %v1196_v53 }
 0x34b   :  { %1144 = vmatmul.mubr.bf16.vlgmr.msra.gmra.mrb[8].mxu1 %v488_v49 }
 0x3fe   :  { %v1105_v56 = vpop.f32.mrb[4].mxu1  ;;  %v1125_v58 = vpop.f32.mrb[8].mxu0 }
 0x3ff   :  { %v587_v59 = vpop.f32.mrb[5].mxu1  ;;  %v718_v60 = vpop.f32.mrb[9].mxu0  ;;  %v735_v1 = vrot.slane %v1105_v56, 7  ;;  %v844_v2 = vrot.slane %v1125_v58, 1 }
 0x400   :  { %v733_v61 = vrot.slane %v587_v59, 7  ;;  %v842_v62 = vrot.slane %v718_v60, 1  ;;  %v1106_v63 = vpop.f32.mrb[6].mxu1  ;;  %v1126_v0 = vpop.f32.mrb[10].mxu0 }
 0x401   :  { %v736_v3 = vrot.slane %v1106_v63, 7  ;;  %v845_v4 = vrot.slane %v1126_v0, 1  ;;  %v590_v6 = vpop.f32.mrb[7].mxu1  ;;  %v721_v7 = vpop.f32.mrb[11].mxu0 }
 0x402   :  { %v734_v9 = vrot.slane %v590_v6, 7  ;;  %v843_v10 = vrot.slane %v721_v7, 1 }
 0x403   :  { %v846_v13 = vsel %vm375_vm2, %v844_v2, %v845_v4  ;;  %v849_v14 = vsel %vm375_vm2, %v845_v4, %v842_v62  ;;  %v740_v15 = vsel %vm269_vm1, %v736_v3, %v733_v61  ;;  %v737_v16 = vsel %vm269_vm1, %v735_v1, %v736_v3 }
 0x404   :  { %v847_v17 = vsel %vm375_vm2, %v843_v10, %v844_v2  ;;  %v848_v18 = vsel %vm375_vm2, %v842_v62, %v843_v10  ;;  %v738_v19 = vsel %vm269_vm1, %v734_v9, %v735_v1  ;;  %v739_v20 = vsel %vm269_vm1, %v733_v61, %v734_v9 }
 0x405   :  { %v743_v21 = vmul.f32 %v738_v19, %v1401_v26  ;;  %v741_v27 = vmul.f32 %v740_v15, %v1397_v23  ;;  %v852_v30 = vmul.f32 %v846_v13, %v1429_v55  ;;  %v744_v32 = vmul.f32 %v737_v16, %v1427_v54 }
 0x406   :  { %v850_v34 = vmul.f32 %v848_v18, %v1411_v46  ;;  %v742_v36 = vmul.f32 %v739_v20, %v1403_v28  ;;  %v853_v26 = vmul.f32 %v849_v14, %v1432_v57  ;;  %v851_v55 = vmul.f32 %v847_v17, %v1423_v52 }
 0x41e   :  { %v1145_v22 = vpop.f32.mrb[8].mxu1 }
 0x41f   :  { %v836_v29 = vadd.f32 %v1145_v22, %v743_v21  ;;  %v827_v31 = vpop.f32.mrb[9].mxu1  ;;  %v910_v21 = vld [vmem:[%s1560_s5] sm:$0x1]  ;;  %s1281_s5 = smov [#allocation7]  }
 0x420   :  { %v828_v33 = vadd.f32 %v827_v31, %v741_v27  ;;  %v1146_v35 = vpop.f32.mrb[10].mxu1 }
 0x421   :  { %v1506_v37 = vadd.f32 %v852_v30, %v836_v29  ;;  %v839_v25 = vadd.f32 %v1146_v35, %v744_v32  ;;  %v830_v38 = vpop.f32.mrb[11].mxu1  ;;  %v912_v29 = vld [vmem:[%s1561_s6] sm:$0x1] }
 0x422   :  { %v1509_v39 = vadd.f32 %v850_v34, %v828_v33  ;;  %v831_v23 = vadd.f32 %v830_v38, %v742_v36 }
 0x423   :  { %v1512_v40 = vadd.f32 %v853_v26, %v839_v25  ;;  %v869_v42 = vmul.f32 %v1506_v37, %v1506_v37 }
 0x424   :  { %v855_v54 = vadd.f32 %v851_v55, %v831_v23  ;;  %v867_v46 = vmul.f32 %v1509_v39, %v1509_v39 }
 0x425   :  { %v870_v44 = vmul.f32 %v1512_v40, %v1512_v40 }
 0x426   :  { %v858_v41 = vadd.f32 %v855_v54, %v1509_v39  ;;  %v868_v28 = vmul.f32 %v855_v54, %v855_v54 }
 0x428   :  { %v859_v57 = vadd.f32 %v858_v41, %v1506_v37  ;;  %v871_v43 = vadd.f32 %v868_v28, %v867_v46 }
 0x42a   :  { %v872_v45 = vadd.f32 %v871_v43, %v869_v42  ;;  %v860_v52 = vadd.f32 %v859_v57, %v1512_v40 }
 0x42c   :  { %v861_v47 = vrot.slane %v860_v52, 4  ;;  %v873_v48 = vadd.f32 %v872_v45, %v870_v44 }
 0x42e   :  { %v862_v49 = vadd.f32 %v861_v47, %v860_v52  ;;  %v874_v50 = vrot.slane %v873_v48, 4 }
 0x430   :  { %v863_v5 = vrot.slane %v862_v49, 2  ;;  %v875_v8 = vadd.f32 %v874_v50, %v873_v48 }
 0x432   :  { %v864_v11 = vadd.f32 %v863_v5, %v862_v49  ;;  %v876_v12 = vrot.slane %v875_v8, 2 }
 0x434   :  { %v865_v51 = vrot.slane %v864_v11, 1  ;;  %v877_v53 = vadd.f32 %v876_v12, %v875_v8 }
 0x436   :  { %v866_v56 = vadd.f32 %v865_v51, %v864_v11  ;;  %v878_v58 = vrot.slane %v877_v53, 1 }
 0x438   :  { %880 = vrot.lane.b32.xlu0 %v866_v56, %s1278_s7  ;;  %v879_v59 = vadd.f32 %v878_v58, %v877_v53 }
 0x43a   :  { %883 = vrot.lane.b32.xlu1 %v879_v59, %s1278_s7 }
 0x4aa   :  { %v881_v60 = vpop.permute.xlu0 %880 }
 0x4ab   :  { %v882_v61 = vadd.f32 %v881_v60, %v866_v56 }
 0x4ac   :  { %v884_v62 = vpop.permute.xlu1 %883 }
 0x4ad   :  { %v885_v63 = vadd.f32 %v884_v62, %v879_v59  ;;  %886 = vrot.lane.b32.xlu0 %v882_v61, %s1279_s8 }
 0x4af   :  { %889 = vrot.lane.b32.xlu1 %v885_v63, %s1279_s8 }
 0x51f   :  { %v887_v0 = vpop.permute.xlu0 %886 }
 0x520   :  { %v888_v1 = vadd.f32 %v887_v0, %v882_v61 }
 0x521   :  { %v890_v2 = vpop.permute.xlu1 %889 }
 0x522   :  { %v891_v3 = vadd.f32 %v890_v2, %v885_v63  ;;  %892 = vrot.lane.b32.xlu0 %v888_v1, %s1280_s12 }
 0x524   :  { %895 = vrot.lane.b32.xlu1 %v891_v3, %s1280_s12 }
 0x594   :  { %v893_v4 = vpop.permute.xlu0 %892 }
 0x595   :  { %v894_v6 = vadd.f32 %v893_v4, %v888_v1 }
 0x596   :  { %v896_v7 = vpop.permute.xlu1 %895 }
 0x597   :  { %v897_v9 = vadd.f32 %v896_v7, %v891_v3  ;;  %898 = vrot.lane.b32.xlu0 %v894_v6, %s1274_s19 }
 0x599   :  { %901 = vrot.lane.b32.xlu1 %v897_v9, %s1274_s19  ;;  %s946_s19 = sshll.u32 %s1281_s5, 4  ;;  %s947_s19 = int_to_ptr.vmem [resolvable:$true] %s946_s19 }
 0x59a   :  { %s1245_s6 = scalar_lea.vmem %s947_s19, 512  ;;  %p1250_p3 = scmp.lt.s32.totalorder %s947_s19, %s947_s19 }
 0x59b   :  { %p1246_p2 = scmp.ne.s32.totalorder %s947_s19, %s1245_s6  ;;  %p1251_p4 = scmp.lt.s32.totalorder %s1245_s6, %s1245_s6 }
 0x59d   :  { %p1252_p5 = por %p1251_p4, %p1250_p3 }
 0x59f   :  { %p1253_p6 = pnand %p1252_p5, %p1246_p2 }
 0x609   :  { %v899_v10 = vpop.permute.xlu0 %898 }
 0x60a   :  { %v900_v13 = vadd.f32 %v899_v10, %v894_v6 }
 0x60b   :  { %v902_v14 = vpop.permute.xlu1 %901 }
 0x60c   :  { %v904_v15 = vmul.f32 0.001953125, %v900_v13  ;;  %v903_v16 = vadd.f32 %v902_v14, %v897_v9 }
 0x60e   :  { %v906_v17 = vmul.f32 %v904_v15, %v904_v15  ;;  %v905_v18 = vmul.f32 0.001953125, %v903_v16 }
 0x610   :  { %v907_v19 = vsub.f32 %v905_v18, %v906_v17 }
 0x612   :  { %v908_v20 = vadd.f32 1e-05, %v907_v19 }
 0x614   :  { %1199 = vrsqrt.f32 %v908_v20 }
 0x61e   :  { %v1200_v22 = vpop.eup %1199 }
 0x61f   :  { %v911_v27 = vmul.f32 %v1200_v22, %v910_v21 }
 0x621   :  { %v913_v30 = vmul.f32 %v911_v27, %v904_v15  ;;  %v918_v31 = vrot.slane %v911_v27, %v1473_v24 }
 0x623   :  { %v914_v32 = vsub.f32 %v912_v29, %v913_v30  ;;  %v919_v33 = vmul.f32 %v918_v31, %v1509_v39  ;;  %v920_v35 = vmul.f32 %v918_v31, %v855_v54  ;;  %v921_v36 = vmul.f32 %v918_v31, %v1506_v37 }
 0x624   :  { %v922_v25 = vmul.f32 %v918_v31, %v1512_v40 }
 0x625   :  { %v927_v34 = vrot.slane %v914_v32, %v1473_v24 }
 0x627   :  { %v929_v26 = vadd.f32 %v927_v34, %v919_v33  ;;  %v930_v38 = vadd.f32 %v927_v34, %v920_v35  ;;  %v931_v23 = vadd.f32 %v927_v34, %v921_v36  ;;  %v932_v55 = vadd.f32 %v927_v34, %v922_v25 }
 0x629   :  { %v933_v46 = vmax.f32 %v929_v26, 0.0  ;;  %v934_v41 = vmax.f32 %v930_v38, 0.0  ;;  %v935_v28 = vmax.f32 %v931_v23, 0.0  ;;  %v936_v42 = vmax.f32 %v932_v55, 0.0 }
 0x62b   :  { %937 = vst [vmem:[#allocation7] sm:$0xff] %v933_v46  ;;  %938 = vst [vmem:[#allocation7 + $0x8] sm:$0xff] %v934_v41 }
 0x62c   :  { %939 = vst [vmem:[#allocation7 + $0x10] sm:$0xff] %v935_v28  ;;  %940 = vst [vmem:[#allocation7 + $0x18] sm:$0xff] %v936_v42 }
 0x62d   :  { %1256 = shalt.err (!%p1253_p6)
}
 0x62e   :  { %s1257_s18 = scalar_lea.hbm %s1564_s9, 512 }
 0x62f   :  { %p1258_p7 = scmp.ne.s32.totalorder %s1564_s9, %s1257_s18  ;;  %p1261_p8 = scmp.lt.u32.totalorder %s1257_s18, %s1564_s9 }
 0x631   :  { %p1263_p9 = pnand %p1261_p8, %p1258_p7 }
 0x633   :  { %1266 = shalt.err (!%p1263_p9)
}
 0x634   :  { %s1282_s24 = smov 128  }
 0x635   :  { %952 = dma.vmem_to_hbm [thread:$0]  %s947_s19, 512, %s1564_s9, [#allocation4], %s1282_s24, %s1282_s24, %s1278_s7  }
 0x636   :  { %1271 = dma.done.wait [#allocation4], 512  }
 0x637   :  { %1272 = vsyncadd [#allocation4], 4294966784 }
 0x638   :  { %956 = vsyncpa [#allocation3], 1 }
 0x639   :  { %957 = vsyncpa [#allocation6], 1 }
 0x63a   :  { %958 = vsyncpa [#allocation4], 1 }

</bundles_post_ra>
